<compile_context>
chip_gen: v7x
topology: tpu7x:2x2x1
jax: 0.10.0
libtpu: 0.0.40
codegen_flags: <defaults>
</compile_context>

<pallas_src>
import math
from functools import partial

import jax
import jax.numpy as jnp
from jax.experimental import pallas as pl
from jax.experimental.pallas import tpu as pltpu


def _round_up(x: int, m: int) -> int:
    return ((x + m - 1) // m) * m


def _actor_kernel(x_ref, w1_ref, b1_ref, w2_ref, b2_ref, wh_ref, bh_ref,
                  out_ref, *, out_dim: int):
    x = x_ref[...]

    # Backbone: Linear -> ReLU -> Linear -> ReLU  (f32 accumulation on the MXU;
    # biases are f32 and are added to the f32 accumulator).
    h1 = jnp.dot(x, w1_ref[...], preferred_element_type=jnp.float32) + b1_ref[...]
    h1 = jnp.maximum(h1, 0.0)
    h2 = jnp.dot(h1.astype(w2_ref.dtype), w2_ref[...],
                 preferred_element_type=jnp.float32) + b2_ref[...]
    h2 = jnp.maximum(h2, 0.0)

    # Fused, lane-padded heads: one (L2, head_cols) matmul, head_cols % 128 == 0.
    #   lanes [0, out_dim)          -> mu logits
    #   lanes [out_dim, 2*out_dim)  -> log_std logits
    #   lanes [2*out_dim, head_cols)-> zero padding (exp(tanh(0)) = 1, sliced off)
    head = jnp.dot(h2.astype(wh_ref.dtype), wh_ref[...],
                   preferred_element_type=jnp.float32) + bh_ref[...]

    # std = exp(tanh(log_std)); mu passes through. Single select on the slab keeps one
    # unmasked lane-dense store; tanh/exp go to the EUP slot.
    col = jax.lax.broadcasted_iota(jnp.int32, head.shape, dimension=1)
    out_ref[...] = jnp.where(col < out_dim, head,
                             jnp.exp(jnp.tanh(head))).astype(out_ref.dtype)


def prepare_actor_params(params, *, compute_dtype=None, head_lanes: int = 128):
    """One-time preparation: fuse the two head Linears, zero-pad the head to a
    lane-dense width (multiple of 128), and (optionally) cast the matmul weights to
    `compute_dtype` (biases stay float32 — they are added to the f32 accumulator)."""
    w1, b1, w2, b2, wmu, bmu, wls, bls = params
    out_dim = wmu.shape[1]

    w_head = jnp.concatenate([wmu, wls], axis=1)     # (L2, 2*out_dim)
    b_head = jnp.concatenate([bmu, bls], axis=1)     # (1,  2*out_dim)
    head_cols = _round_up(max(2 * out_dim, head_lanes), head_lanes)
    pad = head_cols - 2 * out_dim
    if pad:
        w_head = jnp.pad(w_head, ((0, 0), (0, pad)))
        b_head = jnp.pad(b_head, ((0, 0), (0, pad)))

    if compute_dtype is not None:
        w1 = w1.astype(compute_dtype)
        w2 = w2.astype(compute_dtype)
        w_head = w_head.astype(compute_dtype)

    return dict(w1=w1, b1=b1, w2=w2, b2=b2, w_head=w_head, b_head=b_head,
                out_dim=out_dim, head_cols=head_cols, compute_dtype=compute_dtype)


def actor_forward(state, prepared, *, batch_tile: int = 1024, out_dtype=jnp.float32):
    """Returns (mu, std) of the Normal distribution produced by Actor.forward.

    `prepared` is the output of prepare_actor_params (a raw 8-tuple of params is also
    accepted and prepared on the fly, but preparing once is preferred)."""
    if isinstance(prepared, (tuple, list)):
        prepared = prepare_actor_params(tuple(prepared))

    w1, b1 = prepared["w1"], prepared["b1"]
    w2, b2 = prepared["w2"], prepared["b2"]
    w_head, b_head = prepared["w_head"], prepared["b_head"]
    out_dim, head_cols = prepared["out_dim"], prepared["head_cols"]
    compute_dtype = prepared["compute_dtype"]

    B, in_dim = state.shape
    if compute_dtype is not None:
        state = state.astype(compute_dtype)

    # Row alignment: 16 for packed bf16 state tiles, 8 for f32.
    row_align = 16 if state.dtype == jnp.bfloat16 else 8
    TB = min(_round_up(batch_tile, row_align), _round_up(B, row_align))
    B_pad = _round_up(B, TB)
    n_tiles = B_pad // TB
    # v7x: don't collapse a large batch into grid=(1,) — keep >= 2 parallel steps so
    # both TensorCores get work (single-row-align batches stay at one step).
    if n_tiles == 1 and B > row_align and TB >= 2 * row_align:
        TB = _round_up((TB + 1) // 2, row_align)
        B_pad = _round_up(B, TB)
        n_tiles = B_pad // TB

    if B_pad != B:
        state = jnp.pad(state, ((0, B_pad - B), (0, 0)))
    grid = (n_tiles,)

    def resident(a):  # whole-array block, same for every grid step (stays in VMEM)
        return pl.BlockSpec(a.shape, lambda i: (0, 0))

    in_specs = [
        pl.BlockSpec((TB, in_dim), lambda i: (i, 0)),      # state tile, pipelined
        resident(w1), resident(b1),
        resident(w2), resident(b2),
        resident(w_head), resident(b_head),
    ]
    out_spec = pl.BlockSpec((TB, head_cols), lambda i: (i, 0))  # lane-dense slab

    head_out = pl.pallas_call(
        partial(_actor_kernel, out_dim=out_dim),
        out_shape=jax.ShapeDtypeStruct((B_pad, head_cols), out_dtype),
        grid=grid,
        in_specs=in_specs,
        out_specs=out_spec,
        compiler_params=pltpu.CompilerParams(dimension_semantics=("parallel",)),
    )(state, w1, b1, w2, b2, w_head, b_head)

    mu = head_out[:B, :out_dim]
    std = head_out[:B, out_dim:2 * out_dim]
    return mu, std


def init_linear(key, fan_in, fan_out):
    """PyTorch nn.Linear default init, stored transposed as (fan_in, fan_out);
    bias as (1, fan_out)."""
    kw, kb = jax.random.split(key)
    bound = 1.0 / math.sqrt(fan_in)
    w = jax.random.uniform(kw, (fan_in, fan_out), jnp.float32, -bound, bound)
    b = jax.random.uniform(kb, (1, fan_out), jnp.float32, -bound, bound)
    return w, b


def make_actor_params(key, in_dim, out_dim, layer_1_size, layer_2_size):
    k1, k2, k3, k4 = jax.random.split(key, 4)
    w1, b1 = init_linear(k1, in_dim, layer_1_size)
    w2, b2 = init_linear(k2, layer_1_size, layer_2_size)
    wmu, bmu = init_linear(k3, layer_2_size, out_dim)
    wls, bls = init_linear(k4, layer_2_size, out_dim)
    return (w1, b1, w2, b2, wmu, bmu, wls, bls)


if __name__ == "__main__":
    key = jax.random.PRNGKey(0)
    k_params, k_state = jax.random.split(key)

    batch = 2
    in_dim = 32
    out_dim = 8
    layer_1_size = 128
    layer_2_size = 128

    params = make_actor_params(k_params, in_dim, out_dim, layer_1_size, layer_2_size)
    state = jax.random.normal(k_state, (batch, in_dim), jnp.float32)

    # Reference in plain JAX (same math, outside Pallas).
    w1, b1, w2, b2, wmu, bmu, wls, bls = params
    h1 = jnp.maximum(state @ w1 + b1, 0.0)
    h2 = jnp.maximum(h1 @ w2 + b2, 0.0)
    mu_ref = h2 @ wmu + bmu
    std_ref = jnp.exp(jnp.tanh(h2 @ wls + bls))

    # f32 path (prepare fused/padded head once, reuse across calls).
    prep_f32 = prepare_actor_params(params)
    mu, std = actor_forward(state, prep_f32)
    jax.block_until_ready((mu, std))
    assert mu.shape == (batch, out_dim) and std.shape == (batch, out_dim)
    assert jnp.allclose(mu, mu_ref, atol=1e-5, rtol=1e-5)
    assert jnp.allclose(std, std_ref, atol=1e-5, rtol=1e-5)

    # bf16 streaming path (state/weights bf16, biases f32, f32 accumulation).
    prep_bf16 = prepare_actor_params(params, compute_dtype=jnp.bfloat16)
    mu_bf, std_bf = actor_forward(state, prep_bf16)
    jax.block_until_ready((mu_bf, std_bf))
    assert mu_bf.shape == (batch, out_dim) and std_bf.shape == (batch, out_dim)
    assert bool(jnp.all(jnp.isfinite(mu_bf))) and bool(jnp.all(jnp.isfinite(std_bf)))
    assert jnp.allclose(mu_bf, mu_ref, atol=0.5, rtol=0.5)
    assert jnp.allclose(std_bf, std_ref, atol=0.5, rtol=0.5)

    # Larger batch to exercise the multi-step parallel grid / batch padding.
    big_state = jax.random.normal(jax.random.PRNGKey(1), (300, in_dim), jnp.float32)
    mu_big, std_big = actor_forward(big_state, prep_f32, batch_tile=1024)
    jax.block_until_ready((mu_big, std_big))
    h1b = jnp.maximum(big_state @ w1 + b1, 0.0)
    h2b = jnp.maximum(h1b @ w2 + b2, 0.0)
    assert jnp.allclose(mu_big, h2b @ wmu + bmu, atol=1e-5, rtol=1e-5)
    assert jnp.allclose(std_big, jnp.exp(jnp.tanh(h2b @ wls + bls)), atol=1e-5, rtol=1e-5)

    print("KERNEL_OK")
</pallas_src>

<mosaic_0001>
module attributes {stable_mosaic.version = 11 : i64} {
  func.func @_actor_kernel(%arg0: i32, %arg1: memref<8x32xf32, #tpu.memory_space<vmem>>, %arg2: memref<32x128xf32, #tpu.memory_space<vmem>>, %arg3: memref<1x128xf32, #tpu.memory_space<vmem>>, %arg4: memref<128x128xf32, #tpu.memory_space<vmem>>, %arg5: memref<1x128xf32, #tpu.memory_space<vmem>>, %arg6: memref<128x128xf32, #tpu.memory_space<vmem>>, %arg7: memref<1x128xf32, #tpu.memory_space<vmem>>, %arg8: memref<8x128xf32, #tpu.memory_space<vmem>>) attributes {dimension_semantics = [#tpu.dimension_semantics<parallel>], iteration_bounds = array<i64: 1>, scalar_prefetch = 0 : i64, scratch_operands = 0 : i64, tpu.core_type = #tpu.core_type<tc>, window_params = [{transform_indices = @transform_0, window_bounds = array<i64: 8, 32>}, {pipeline_mode = #tpu.pipeline_mode<synchronous>, transform_indices = @transform_1, window_bounds = array<i64: 32, 128>}, {pipeline_mode = #tpu.pipeline_mode<synchronous>, transform_indices = @transform_2, window_bounds = array<i64: 1, 128>}, {pipeline_mode = #tpu.pipeline_mode<synchronous>, transform_indices = @transform_3, window_bounds = array<i64: 128, 128>}, {pipeline_mode = #tpu.pipeline_mode<synchronous>, transform_indices = @transform_4, window_bounds = array<i64: 1, 128>}, {pipeline_mode = #tpu.pipeline_mode<synchronous>, transform_indices = @transform_5, window_bounds = array<i64: 128, 128>}, {pipeline_mode = #tpu.pipeline_mode<synchronous>, transform_indices = @transform_6, window_bounds = array<i64: 1, 128>}, {transform_indices = @transform_7, window_bounds = array<i64: 8, 128>}]} {
    %c0 = arith.constant 0 : index
    %c0_0 = arith.constant 0 : index
    %0 = vector.load %arg1[%c0, %c0_0] : memref<8x32xf32, #tpu.memory_space<vmem>>, vector<8x32xf32>
    %c0_1 = arith.constant 0 : index
    %c0_2 = arith.constant 0 : index
    %1 = vector.load %arg2[%c0_1, %c0_2] : memref<32x128xf32, #tpu.memory_space<vmem>>, vector<32x128xf32>
    %cst = arith.constant dense<0.000000e+00> : vector<8x128xf32>
    %2 = tpu.matmul %0, %1, %cst {dimension_numbers = #tpu.dot_dimension_numbers<[1], [0], [0], [1], [0, 0, 1, 1], [], []>} : vector<8x32xf32>, vector<32x128xf32>, vector<8x128xf32> -> vector<8x128xf32>
    %c0_3 = arith.constant 0 : index
    %c0_4 = arith.constant 0 : index
    %3 = vector.load %arg3[%c0_3, %c0_4] : memref<1x128xf32, #tpu.memory_space<vmem>>, vector<1x128xf32>
    %4 = vector.broadcast %3 : vector<1x128xf32> to vector<8x128xf32>
    %5 = arith.addf %2, %4 : vector<8x128xf32>
    %cst_5 = arith.constant 0.000000e+00 : f32
    %6 = vector.broadcast %cst_5 : f32 to vector<8x128xf32>
    %7 = arith.maximumf %5, %6 : vector<8x128xf32>
    %c0_6 = arith.constant 0 : index
    %c0_7 = arith.constant 0 : index
    %8 = vector.load %arg4[%c0_6, %c0_7] : memref<128x128xf32, #tpu.memory_space<vmem>>, vector<128x128xf32>
    %cst_8 = arith.constant dense<0.000000e+00> : vector<8x128xf32>
    %9 = tpu.matmul %7, %8, %cst_8 {dimension_numbers = #tpu.dot_dimension_numbers<[1], [0], [0], [1], [0, 0, 1, 1], [], []>} : vector<8x128xf32>, vector<128x128xf32>, vector<8x128xf32> -> vector<8x128xf32>
    %c0_9 = arith.constant 0 : index
    %c0_10 = arith.constant 0 : index
    %10 = vector.load %arg5[%c0_9, %c0_10] : memref<1x128xf32, #tpu.memory_space<vmem>>, vector<1x128xf32>
    %11 = vector.broadcast %10 : vector<1x128xf32> to vector<8x128xf32>
    %12 = arith.addf %9, %11 : vector<8x128xf32>
    %cst_11 = arith.constant 0.000000e+00 : f32
    %13 = vector.broadcast %cst_11 : f32 to vector<8x128xf32>
    %14 = arith.maximumf %12, %13 : vector<8x128xf32>
    %c0_12 = arith.constant 0 : index
    %c0_13 = arith.constant 0 : index
    %15 = vector.load %arg6[%c0_12, %c0_13] : memref<128x128xf32, #tpu.memory_space<vmem>>, vector<128x128xf32>
    %cst_14 = arith.constant dense<0.000000e+00> : vector<8x128xf32>
    %16 = tpu.matmul %14, %15, %cst_14 {dimension_numbers = #tpu.dot_dimension_numbers<[1], [0], [0], [1], [0, 0, 1, 1], [], []>} : vector<8x128xf32>, vector<128x128xf32>, vector<8x128xf32> -> vector<8x128xf32>
    %c0_15 = arith.constant 0 : index
    %c0_16 = arith.constant 0 : index
    %17 = vector.load %arg7[%c0_15, %c0_16] : memref<1x128xf32, #tpu.memory_space<vmem>>, vector<1x128xf32>
    %18 = vector.broadcast %17 : vector<1x128xf32> to vector<8x128xf32>
    %19 = arith.addf %16, %18 : vector<8x128xf32>
    %20 = tpu.iota {dimensions = array<i32: 1>} : vector<8x128xi32>
    %c8_i32 = arith.constant 8 : i32
    %21 = vector.broadcast %c8_i32 : i32 to vector<8x128xi32>
    %22 = arith.cmpi slt, %20, %21 : vector<8x128xi32>
    %23 = math.tanh %19 : vector<8x128xf32>
    %24 = math.exp %23 : vector<8x128xf32>
    %25 = arith.select %22, %19, %24 : vector<8x128xi1>, vector<8x128xf32>
    %c0_17 = arith.constant 0 : index
    %c0_18 = arith.constant 0 : index
    %26 = vector.load %arg8[%c0_17, %c0_18] : memref<8x128xf32, #tpu.memory_space<vmem>>, vector<8x128xf32>
    tpu.vector_store %arg8[%c0_17, %c0_18], %25 {strides = array<i32>} : memref<8x128xf32, #tpu.memory_space<vmem>>, vector<8x128xf32>,
    return
  }
  func.func @transform_0(%arg0: i32) -> (i32, i32) {
    %c0_i32 = arith.constant 0 : i32
    %c0_i32_0 = arith.constant 0 : i32
    return %arg0, %c0_i32 : i32, i32
  }
  func.func @transform_1(%arg0: i32) -> (i32, i32) {
    %c0_i32 = arith.constant 0 : i32
    %c0_i32_0 = arith.constant 0 : i32
    %c0_i32_1 = arith.constant 0 : i32
    return %c0_i32, %c0_i32_0 : i32, i32
  }
  func.func @transform_2(%arg0: i32) -> (i32, i32) {
    %c0_i32 = arith.constant 0 : i32
    %c0_i32_0 = arith.constant 0 : i32
    %c0_i32_1 = arith.constant 0 : i32
    return %c0_i32, %c0_i32_0 : i32, i32
  }
  func.func @transform_3(%arg0: i32) -> (i32, i32) {
    %c0_i32 = arith.constant 0 : i32
    %c0_i32_0 = arith.constant 0 : i32
    %c0_i32_1 = arith.constant 0 : i32
    return %c0_i32, %c0_i32_0 : i32, i32
  }
  func.func @transform_4(%arg0: i32) -> (i32, i32) {
    %c0_i32 = arith.constant 0 : i32
    %c0_i32_0 = arith.constant 0 : i32
    %c0_i32_1 = arith.constant 0 : i32
    return %c0_i32, %c0_i32_0 : i32, i32
  }
  func.func @transform_5(%arg0: i32) -> (i32, i32) {
    %c0_i32 = arith.constant 0 : i32
    %c0_i32_0 = arith.constant 0 : i32
    %c0_i32_1 = arith.constant 0 : i32
    return %c0_i32, %c0_i32_0 : i32, i32
  }
  func.func @transform_6(%arg0: i32) -> (i32, i32) {
    %c0_i32 = arith.constant 0 : i32
    %c0_i32_0 = arith.constant 0 : i32
    %c0_i32_1 = arith.constant 0 : i32
    return %c0_i32, %c0_i32_0 : i32, i32
  }
  func.func @transform_7(%arg0: i32) -> (i32, i32) {
    %c0_i32 = arith.constant 0 : i32
    %c0_i32_0 = arith.constant 0 : i32
    return %arg0, %c0_i32 : i32, i32
  }
}

</mosaic_0001>

<bundles_post_ra>
// kernel: tpu_custom_call.1
= control target key start
LH: loop header
LB: loop body
LE: loop exit
PB: predicated region body
PF: predicated region fallthrough
CT: control target
= control target key end

     0   :  { %12 = vsyncpa [#allocation3], 0  ;;  %s838_s0 = inlined_call_operand.hbm [shape: f32[8,32], index: 0, kind: input, shape index: {}]   ;;  %s839_s1 = inlined_call_operand.hbm [shape: f32[32,128], index: 1, kind: input, shape index: {}]   ;;  %s840_s2 = inlined_call_operand.vmem [shape: f32[1,128], index: 2, kind: input, shape index: {}]   ;;  %s841_s3 = inlined_call_operand.hbm [shape: f32[128,128], index: 3, kind: input, shape index: {}]   ;;  %s842_s4 = inlined_call_operand.vmem [shape: f32[1,128], index: 4, kind: input, shape index: {}]   ;;  %s843_s5 = inlined_call_operand.hbm [shape: f32[128,128], index: 5, kind: input, shape index: {}]   ;;  %s844_s6 = inlined_call_operand.vmem [shape: f32[1,128], index: 6, kind: input, shape index: {}]   ;;  %s845_s7 = inlined_call_operand.hbm [shape: f32[8,128], index: 7, kind: output, shape index: {}]  }
   0x1   :  { %13 = vsyncpa [#allocation6], 0 }
   0x2   :  { %14 = vsyncpa [#allocation9], 0 }
   0x3   :  { %15 = vsyncpa [#allocation4], 0  ;;  %s689_s24 = smov [#allocation5]   ;;  %s571_s28 = scalar_lea.hbm %s839_s1, 512 }
   0x4   :  { %s31_s25 = sshll.u32 %s689_s24, 4  ;;  %p572_p0 = scmp.ne.s32.totalorder %s839_s1, %s571_s28  ;;  %s32_s25 = int_to_ptr.vmem [resolvable:$true] %s31_s25 }
   0x5   :  { %p575_p1 = scmp.lt.u32.totalorder %s571_s28, %s839_s1 }
   0x7   :  { %p577_p2 = pnand %p575_p1, %p572_p0 }
   0x9   :  { %580 = shalt.err (!%p577_p2)
}
   0xa   :  { %s581_s10 = scalar_lea.vmem %s32_s25, 512  ;;  %p586_p4 = scmp.lt.s32.totalorder %s32_s25, %s32_s25 }
   0xb   :  { %p582_p3 = scmp.ne.s32.totalorder %s32_s25, %s581_s10  ;;  %p587_p5 = scmp.lt.s32.totalorder %s581_s10, %s581_s10 }
   0xd   :  { %p588_p6 = por %p587_p5, %p586_p4 }
   0xf   :  { %p589_p7 = pnand %p588_p6, %p582_p3 }
  0x11   :  { %592 = shalt.err (!%p589_p7)
}
  0x12   :  { %s690_s11 = smov 128   ;;  %s691_s12 = smov 8  }
  0x13   :  { %37 = dma.hbm_to_vmem [thread:$0]  %s839_s1, 512, %s32_s25, [#allocation6], %s690_s11, %s690_s11, %s691_s12  }
  0x14   :  { %s692_s15 = smov [#allocation2]   ;;  %s693_s17 = smov [#allocation7]  }
  0x15   :  { %s22_s16 = sshll.u32 %s692_s15, 4  ;;  %s45_s18 = sshll.u32 %s693_s17, 4  ;;  %s23_s16 = int_to_ptr.vmem [resolvable:$true] %s22_s16  ;;  %s46_s18 = int_to_ptr.vmem [resolvable:$true] %s45_s18 }
  0x16   :  { %s593_s21 = scalar_lea.hbm %s838_s0, 128 }
  0x17   :  { %p594_p8 = scmp.ne.s32.totalorder %s838_s0, %s593_s21  ;;  %p597_p9 = scmp.lt.u32.totalorder %s593_s21, %s838_s0 }
  0x19   :  { %p599_p10 = pnand %p597_p9, %p594_p8 }
  0x1b   :  { %602 = shalt.err (!%p599_p10)
}
  0x1c   :  { %s603_s1 = scalar_lea.vmem %s23_s16, 128  ;;  %p608_p12 = scmp.lt.s32.totalorder %s23_s16, %s23_s16 }
  0x1d   :  { %p604_p11 = scmp.ne.s32.totalorder %s23_s16, %s603_s1  ;;  %p609_p13 = scmp.lt.s32.totalorder %s603_s1, %s603_s1 }
  0x1f   :  { %p610_p0 = por %p609_p13, %p608_p12 }
  0x21   :  { %p611_p1 = pnand %p610_p0, %p604_p11 }
  0x23   :  { %614 = shalt.err (!%p611_p1)
}
  0x24   :  { %25 = dma.hbm_to_vmem [thread:$0]  %s838_s0, 128, %s23_s16, [#allocation3]  }
  0x25   :  { %s615_s30 = scalar_lea.hbm %s841_s3, 2048 }
  0x26   :  { %p616_p2 = scmp.ne.s32.totalorder %s841_s3, %s615_s30  ;;  %p619_p3 = scmp.lt.u32.totalorder %s615_s30, %s841_s3 }
  0x28   :  { %p621_p4 = pnand %p619_p3, %p616_p2 }
  0x2a   :  { %624 = shalt.err (!%p621_p4)
}
  0x2b   :  { %s625_s14 = scalar_lea.vmem %s46_s18, 2048  ;;  %p630_p6 = scmp.lt.s32.totalorder %s46_s18, %s46_s18 }
  0x2c   :  { %p626_p5 = scmp.ne.s32.totalorder %s46_s18, %s625_s14  ;;  %p631_p7 = scmp.lt.s32.totalorder %s625_s14, %s625_s14 }
  0x2e   :  { %p632_p8 = por %p631_p7, %p630_p6 }
  0x30   :  { %p633_p9 = pnand %p632_p8, %p626_p5 }
  0x32   :  { %636 = shalt.err (!%p633_p9)
}
  0x33   :  { %51 = dma.hbm_to_vmem [thread:$0]  %s841_s3, 2048, %s46_s18, [#allocation6], %s690_s11, %s690_s11, %s691_s12  }
  0x34   :  { %s694_s16 = smov [#allocation8]   ;;  %s637_s21 = scalar_lea.hbm %s843_s5, 2048 }
  0x35   :  { %s59_s17 = sshll.u32 %s694_s16, 4  ;;  %p638_p10 = scmp.ne.s32.totalorder %s843_s5, %s637_s21  ;;  %s60_s17 = int_to_ptr.vmem [resolvable:$true] %s59_s17 }
  0x36   :  { %p641_p11 = scmp.lt.u32.totalorder %s637_s21, %s843_s5 }
  0x38   :  { %p643_p12 = pnand %p641_p11, %p638_p10 }
  0x3a   :  { %646 = shalt.err (!%p643_p12)
}
  0x3b   :  { %s647_s1 = scalar_lea.vmem %s60_s17, 2048  ;;  %p652_p0 = scmp.lt.s32.totalorder %s60_s17, %s60_s17 }
  0x3c   :  { %p648_p13 = scmp.ne.s32.totalorder %s60_s17, %s647_s1  ;;  %p653_p1 = scmp.lt.s32.totalorder %s647_s1, %s647_s1 }
  0x3e   :  { %p654_p2 = por %p653_p1, %p652_p0 }
  0x40   :  { %p655_p3 = pnand %p654_p2, %p648_p13 }
  0x42   :  { %658 = shalt.err (!%p655_p3)
}
  0x43   :  { %65 = dma.hbm_to_vmem [thread:$0]  %s843_s5, 2048, %s60_s17, [#allocation9], %s690_s11, %s690_s11, %s691_s12  }
  0x44   :  { %681 = dma.done.wait [#allocation3], 128  }
  0x45   :  { %682 = vsyncadd [#allocation3], 4294967168 }
  0x46   :  { %683 = dma.done.wait [#allocation6], 2560  }
  0x47   :  { %684 = vsyncadd [#allocation6], 4294964736 }
  0x48   :  { %685 = dma.done.wait [#allocation9], 2048  }
  0x49   :  { %686 = vsyncadd [#allocation9], 4294965248  ;;  %v695_v0 = vmov 0.0|0.0   ;;  %vm696_vm0 = vmmov 0   ;;  %v697_v1 = vmov 0.0   ;;  %v81_v2 = vld [vmem:[#allocation5] sm:$0xff] }
  0x4a   :  { %503 = vmatprep.subr.bf16.mxu0 %v695_v0  ;;  %430 = vmatprep.mubr.msk.f32.mxu0 %vm696_vm0, %v697_v1  ;;  %v82_v3 = vld [vmem:[#allocation5 + $0x8] sm:$0xff]  ;;  %v83_v4 = vld [vmem:[#allocation5 + $0x10] sm:$0xff]  ;;  %v84_v6 = vld [vmem:[#allocation5 + $0x18] sm:$0xff]  ;;  %vm92_vm1 = vcmask 261120   ;;  %s698_s28 = smov [#allocation10]  }
  0x4b   :  { %509 = vmatprep.subr.bf16.mxu1 %v695_v0  ;;  %465 = vmatprep.mubr.msk.f32.mxu1 %vm696_vm0, %v697_v1  ;;  %v504_v5 = vpack.c.bf16 %v82_v3, %v81_v2  ;;  %v167_v7 = vld [vmem:[#allocation7] sm:$0xff]  ;;  %v168_v8 = vld [vmem:[#allocation7 + $0x8] sm:$0xff]  ;;  %v169_v9 = vld [vmem:[#allocation7 + $0x10] sm:$0xff]  ;;  %v507_v11 = vpack.c.bf16 %v84_v6, %v83_v4 }
  0x4c   :  { %v170_v10 = vld [vmem:[#allocation7 + $0x18] sm:$0xff]  ;;  %v510_v12 = vpack.c.bf16 %v168_v8, %v167_v7  ;;  %v171_v14 = vld [vmem:[#allocation7 + $0x20] sm:$0xff]  ;;  %v172_v15 = vld [vmem:[#allocation7 + $0x28] sm:$0xff] }
  0x4d   :  { %505 = vmatpush3.bf16.msra.mxu0 %v504_v5  ;;  %v513_v13 = vpack.c.bf16 %v170_v10, %v169_v9  ;;  %v80_v16 = vld [vmem:[#allocation2] sm:$0xff]  ;;  %v516_v17 = vpack.c.bf16 %v172_v15, %v171_v14  ;;  %v173_v18 = vld [vmem:[#allocation7 + $0x30] sm:$0xff]  ;;  %v175_v21 = vld [vmem:[#allocation7 + $0x40] sm:$0xff]  ;;  %v354_v9 = vlaneseq }
  0x4e   :  { %506 = vmatprep.subr.bf16.mxu0 %v695_v0  ;;  %511 = vmatpush3.bf16.msra.mxu1 %v510_v12  ;;  %v174_v19 = vld [vmem:[#allocation7 + $0x38] sm:$0xff]  ;;  %v176_v22 = vld [vmem:[#allocation7 + $0x48] sm:$0xff]  ;;  %v177_v24 = vld [vmem:[#allocation7 + $0x50] sm:$0xff] }
  0x4f   :  { %512 = vmatprep.subr.bf16.mxu1 %v695_v0  ;;  %v519_v20 = vpack.c.bf16 %v174_v19, %v173_v18  ;;  %v522_v23 = vpack.c.bf16 %v176_v22, %v175_v21  ;;  %v178_v25 = vld [vmem:[#allocation7 + $0x58] sm:$0xff]  ;;  %v179_v27 = vld [vmem:[#allocation7 + $0x60] sm:$0xff]  ;;  %v180_v28 = vld [vmem:[#allocation7 + $0x68] sm:$0xff]  ;;  %v355_v10 = vand.u32 127, %v354_v9 }
  0x50   :  { %v525_v26 = vpack.c.bf16 %v178_v25, %v177_v24  ;;  %v528_v29 = vpack.c.bf16 %v180_v28, %v179_v27  ;;  %v181_v30 = vld [vmem:[#allocation7 + $0x70] sm:$0xff]  ;;  %v182_v31 = vld [vmem:[#allocation7 + $0x78] sm:$0xff]  ;;  %v261_v33 = vld [vmem:[#allocation8] sm:$0xff] }
  0x51   :  { %508 = vmatpush3.bf16.msra.mxu0 %v507_v11  ;;  %v531_v32 = vpack.c.bf16 %v182_v31, %v181_v30  ;;  %v262_v34 = vld [vmem:[#allocation8 + $0x8] sm:$0xff]  ;;  %v263_v35 = vld [vmem:[#allocation8 + $0x10] sm:$0xff]  ;;  %v264_v37 = vld [vmem:[#allocation8 + $0x18] sm:$0xff]  ;;  %vm356_vm2 = vcmp.lt.s32.totalorder %v355_v10, 8 }
  0x52   :  { %533 = vmatprep.subr.bf16.mxu0 %v695_v0  ;;  %514 = vmatpush3.bf16.msra.mxu1 %v513_v13  ;;  %v534_v36 = vpack.c.bf16 %v262_v34, %v261_v33  ;;  %v537_v38 = vpack.c.bf16 %v264_v37, %v263_v35  ;;  %v265_v39 = vld [vmem:[#allocation8 + $0x20] sm:$0xff]  ;;  %v266_v40 = vld [vmem:[#allocation8 + $0x28] sm:$0xff]  ;;  %v267_v42 = vld [vmem:[#allocation8 + $0x30] sm:$0xff] }
  0x53   :  { %515 = vmatprep.subr.bf16.mxu1 %v695_v0  ;;  %v540_v41 = vpack.c.bf16 %v266_v40, %v265_v39  ;;  %v268_v43 = vld [vmem:[#allocation8 + $0x38] sm:$0xff]  ;;  %v269_v45 = vld [vmem:[#allocation8 + $0x40] sm:$0xff]  ;;  %v270_v46 = vld [vmem:[#allocation8 + $0x48] sm:$0xff] }
  0x54   :  { %431 = vmatmul.mubr.msk.f32.vlgmr.msra.gmra.mrb[0].mxu0 %vm92_vm1, %v80_v16  ;;  %v543_v44 = vpack.c.bf16 %v268_v43, %v267_v42  ;;  %v546_v47 = vpack.c.bf16 %v270_v46, %v269_v45  ;;  %v271_v48 = vld [vmem:[#allocation8 + $0x50] sm:$0xff]  ;;  %v272_v49 = vld [vmem:[#allocation8 + $0x58] sm:$0xff]  ;;  %v273_v51 = vld [vmem:[#allocation8 + $0x60] sm:$0xff] }
  0x55   :  { %500 = vmatprep.mubr.msk.f32.mxu0 %vm696_vm0, %v697_v1  ;;  %535 = vmatpush3.bf16.msra.mxu0 %v534_v36  ;;  %v549_v50 = vpack.c.bf16 %v272_v49, %v271_v48  ;;  %v274_v52 = vld [vmem:[#allocation8 + $0x68] sm:$0xff]  ;;  %v379_v54 = vld [vmem:[%s840_s2] ss:$0 sm:$0xff]  ;;  %v275_v59 = vld [vmem:[#allocation8 + $0x70] sm:$0xff] }
  0x56   :  { %517 = vmatpush3.bf16.msra.mxu1 %v516_v17  ;;  %536 = vmatprep.subr.bf16.mxu0 %v695_v0  ;;  %v552_v53 = vpack.c.bf16 %v274_v52, %v273_v51  ;;  %v276_v60 = vld [vmem:[#allocation8 + $0x78] sm:$0xff] }
  0x57   :  { %518 = vmatprep.subr.bf16.mxu1 %v695_v0  ;;  %v555_v61 = vpack.c.bf16 %v276_v60, %v275_v59  ;;  %v381_v62 = vld [vmem:[%s842_s4] ss:$0 sm:$0xff]  ;;  %s368_s4 = sshll.u32 %s698_s28, 4  ;;  %s369_s4 = int_to_ptr.vmem [resolvable:$true] %s368_s4 }
  0x58   :  { %v382_v3 = vld [vmem:[%s844_s6] ss:$0 sm:$0xff]  ;;  %s659_s29 = scalar_lea.vmem %s369_s4, 128  ;;  %p664_p5 = scmp.lt.s32.totalorder %s369_s4, %s369_s4 }
  0x59   :  { %538 = vmatpush3.bf16.msra.mxu0 %v537_v38  ;;  %p660_p4 = scmp.ne.s32.totalorder %s369_s4, %s659_s29  ;;  %p665_p6 = scmp.lt.s32.totalorder %s659_s29, %s659_s29 }
  0x5a   :  { %520 = vmatpush3.bf16.msra.mxu1 %v519_v20  ;;  %539 = vmatprep.subr.bf16.mxu0 %v695_v0 }
  0x5b   :  { %521 = vmatprep.subr.bf16.mxu1 %v695_v0  ;;  %p666_p7 = por %p665_p6, %p664_p5 }
  0x5d   :  { %541 = vmatpush3.bf16.msra.mxu0 %v540_v41  ;;  %p667_p8 = pnand %p666_p7, %p660_p4 }
  0x5e   :  { %523 = vmatpush3.bf16.msra.mxu1 %v522_v23  ;;  %542 = vmatprep.subr.bf16.mxu0 %v695_v0 }
  0x5f   :  { %524 = vmatprep.subr.bf16.mxu1 %v695_v0 }
  0x61   :  { %544 = vmatpush3.bf16.msra.mxu0 %v543_v44 }
  0x62   :  { %526 = vmatpush3.bf16.msra.mxu1 %v525_v26  ;;  %545 = vmatprep.subr.bf16.mxu0 %v695_v0 }
  0x63   :  { %527 = vmatprep.subr.bf16.mxu1 %v695_v0 }
  0x65   :  { %547 = vmatpush3.bf16.msra.mxu0 %v546_v47 }
  0x66   :  { %529 = vmatpush3.bf16.msra.mxu1 %v528_v29  ;;  %548 = vmatprep.subr.bf16.mxu0 %v695_v0 }
  0x67   :  { %530 = vmatprep.subr.bf16.mxu1 %v695_v0 }
  0x69   :  { %550 = vmatpush3.bf16.msra.mxu0 %v549_v50 }
  0x6a   :  { %532 = vmatpush3.bf16.msra.mxu1 %v531_v32  ;;  %551 = vmatprep.subr.bf16.mxu0 %v695_v0 }
  0x6d   :  { %553 = vmatpush3.bf16.msra.mxu0 %v552_v53 }
  0x6e   :  { %554 = vmatprep.subr.bf16.mxu0 %v695_v0 }
  0x71   :  { %556 = vmatpush3.bf16.msra.mxu0 %v555_v61 }
 0x127   :  { %v162_v55 = vpop.f32.mrb[0].mxu0 }
 0x128   :  { %v163_v56 = vadd.f32 %v379_v54, %v162_v55  ;;  %v432_v57 = vpop.f32.mrb[1].mxu0 }
 0x12a   :  { %v166_v58 = vmax.f32 %v163_v56, 0.0 }
 0x12c   :  { %466 = vmatmul.mubr.f32.vlgmr.msra.gmra.mrb[0].mxu1 %v166_v58 }
 0x1ff   :  { %v256_v63 = vpop.f32.mrb[0].mxu1 }
 0x200   :  { %v257_v1 = vadd.f32 %v381_v62, %v256_v63  ;;  %v467_v0 = vpop.f32.mrb[1].mxu1 }
 0x202   :  { %v260_v2 = vmax.f32 %v257_v1, 0.0 }
 0x204   :  { %501 = vmatmul.mubr.f32.vlgmr.msra.gmra.mrb[2].mxu0 %v260_v2 }
 0x2d7   :  { %v350_v4 = vpop.f32.mrb[2].mxu0 }
 0x2d8   :  { %v351_v5 = vadd.f32 %v382_v3, %v350_v4  ;;  %v502_v6 = vpop.f32.mrb[3].mxu0 }
 0x2da   :  { %567 = vtanh.f32 %v351_v5 }
 0x2e4   :  { %v568_v7 = vpop.eup %567 }
 0x2e5   :  { %v358_v8 = vmul.f32 1.442695, %v568_v7 }
 0x2e7   :  { %569 = vpow2.f32 %v358_v8 }
 0x2f1   :  { %v570_v11 = vpop.eup %569 }
 0x2f2   :  { %v360_v12 = vsel %vm356_vm2, %v351_v5, %v570_v11 }
 0x2f3   :  { %361 = vst [vmem:[#allocation10] sm:$0xff] %v360_v12 }
 0x2f4   :  { %670 = shalt.err (!%p667_p8)
}
 0x2f5   :  { %s671_s8 = scalar_lea.hbm %s845_s7, 128 }
 0x2f6   :  { %p672_p9 = scmp.ne.s32.totalorder %s845_s7, %s671_s8  ;;  %p675_p10 = scmp.lt.u32.totalorder %s671_s8, %s845_s7 }
 0x2f8   :  { %p677_p11 = pnand %p675_p10, %p672_p9 }
 0x2fa   :  { %680 = shalt.err (!%p677_p11)
}
 0x2fb   :  { %371 = dma.vmem_to_hbm [thread:$0]  %s369_s4, 128, %s845_s7, [#allocation4]  }
 0x2fc   :  { %687 = dma.done.wait [#allocation4], 128  }
 0x2fd   :  { %688 = vsyncadd [#allocation4], 4294967168 }
 0x2fe   :  { %375 = vsyncpa [#allocation3], 1 }
 0x2ff   :  { %376 = vsyncpa [#allocation6], 1 }
 0x300   :  { %377 = vsyncpa [#allocation9], 1 }
 0x301   :  { %378 = vsyncpa [#allocation4], 1 }

</bundles_post_ra>
